<compile_context>
chip_gen: v7x
topology: tpu7x:2x2x1
jax: 0.10.0
libtpu: 0.0.40
codegen_flags: <defaults>
</compile_context>

<pallas_src>
import math

import jax
import jax.numpy as jnp
from jax.experimental import pallas as pl
from jax.experimental.pallas import tpu as pltpu


def _round_up(x, m):
    return ((x + m - 1) // m) * m


def _query_vmem_limit():
    """Generation-aware scoped-VMEM limit: ~3/4 of physical VMEM, capped at 96 MiB
    (v5e/v6e have 128 MiB, v7x only 64 MiB -> 48 MiB).  Falls back to a v7x-safe
    48 MiB if the hardware query is unavailable."""
    phys = 64 * 1024 * 1024
    try:
        info = pltpu.get_tpu_info()
        cap = getattr(info, "vmem_capacity_bytes", None)
        if cap:
            phys = int(cap)
    except Exception:
        pass
    return int(min(max(phys * 3 // 4, 32 * 1024 * 1024), 96 * 1024 * 1024))


_VMEM_LIMIT = _query_vmem_limit()


def _pick_tile_v(H, V, weight_bytes, budget_bytes):
    """Largest vocab tile whose double-buffered (H, tv) weight stream fits the budget
    and is not wider than the (128-rounded) vocab itself."""
    v128 = _round_up(max(V, 1), 128)
    for tv in (2048, 1024, 512, 256, 128):
        if tv <= v128 and 2 * H * tv * weight_bytes <= budget_bytes:
            return tv
    return 128


# ---------------------------------------------------------------------------
# shared in-kernel helper (all elementwise math stays f32: v5e has no bf16 VPU/EUP)
# ---------------------------------------------------------------------------
def _lstm_activations(gates, c0, H):
    # PyTorch LSTM gate order: i, f, g, o
    i = jax.nn.sigmoid(gates[:, 0 * H:1 * H])
    f = jax.nn.sigmoid(gates[:, 1 * H:2 * H])
    g = jnp.tanh(gates[:, 2 * H:3 * H])
    o = jax.nn.sigmoid(gates[:, 3 * H:4 * H])
    c1 = f * c0 + i * g
    h1 = o * jnp.tanh(c1)
    return h1, c1


# ---------------------------------------------------------------------------
# fused kernel, use_attention = False
#   grid axis = vocab tiles ("arbitrary": the cell runs once at j==0 and its result
#   is reused by every later tile, so iterations are NOT independent)
# ---------------------------------------------------------------------------
def _plain_fused_kernel(x_ref, h0_ref, c0_ref, w_ref, b_ref, fcw_ref, fcb_ref,
                        pred_ref, h1_ref, c1_ref):
    H = h0_ref.shape[1]

    @pl.when(pl.program_id(0) == 0)
    def _():
        wd = w_ref.dtype
        # ONE fused gate matmul over [h0 ; embedded] (weights pre-concatenated)
        xh = jnp.concatenate([h0_ref[...].astype(wd), x_ref[...]], axis=1)
        gates = (jnp.dot(xh, w_ref[...], preferred_element_type=jnp.float32)
                 + b_ref[...])                                       # (B, 4H) f32
        h1, c1 = _lstm_activations(gates, c0_ref[...], H)
        h1_ref[...] = h1
        c1_ref[...] = c1

    # fc_out tile: h1 lives in the VMEM-resident output block (constant index map),
    # so no HBM round trip / second kernel launch per token.
    pred_ref[...] = (jnp.dot(h1_ref[...].astype(fcw_ref.dtype), fcw_ref[...],
                             preferred_element_type=jnp.float32) + fcb_ref[...])


# ---------------------------------------------------------------------------
# fused kernel, use_attention = True
# ---------------------------------------------------------------------------
def _attn_fused_kernel(x_ref, h0_ref, c0_ref, enc_ref, eproj_ref,
                       awh_ref, v_ref, w_ref, b_ref, fcw_ref, fcb_ref,
                       pred_ref, h1_ref, c1_ref):
    H = h0_ref.shape[1]

    @pl.when(pl.program_id(0) == 0)
    def _():
        h0 = h0_ref[...]                                             # (B, H) f32

        # ---- attention: the encoder projection (enc @ W_e + b) is step-invariant and
        #      was hoisted out of the kernel; only the tiny (B,H)x(H,H) hidden
        #      projection remains per token ----
        hproj = jnp.dot(h0, awh_ref[...], preferred_element_type=jnp.float32)   # (B,H)
        energy = jnp.tanh(hproj[:, None, :]
                          + eproj_ref[...].astype(jnp.float32))      # (B, S, H) f32

        # v-dot kept on the VPU (MXU form would need a (B*S,1)->(B,S) lane relayout)
        scores = jnp.sum(energy * v_ref[...].reshape(1, 1, H), axis=2)   # (B, S)
        scores = scores - jnp.max(scores, axis=1, keepdims=True)
        e = jnp.exp(scores)
        attn = e / jnp.sum(e, axis=1, keepdims=True)                 # exact softmax

        # context = bmm(attn, enc) on the MXU (batched dot_general), f32 accumulate
        ctx = jnp.einsum("bks,bsh->bkh",
                         attn[:, None, :].astype(enc_ref.dtype), enc_ref[...],
                         preferred_element_type=jnp.float32)[:, 0, :]    # (B, H)

        # ---- LSTM cell: ONE fused gate matmul over [h0 ; context ; embedded] ----
        wd = w_ref.dtype
        xh = jnp.concatenate([h0.astype(wd), ctx.astype(wd), x_ref[...]], axis=1)
        gates = (jnp.dot(xh, w_ref[...], preferred_element_type=jnp.float32)
                 + b_ref[...])                                       # (B, 4H) f32
        h1, c1 = _lstm_activations(gates, c0_ref[...], H)
        h1_ref[...] = h1
        c1_ref[...] = c1

    # per-tile fc_out matmul straight from the VMEM-resident h1
    pred_ref[...] = (jnp.dot(h1_ref[...].astype(fcw_ref.dtype), fcw_ref[...],
                             preferred_element_type=jnp.float32) + fcb_ref[...])


# ---------------------------------------------------------------------------
# one-time parameter preparation (hoisted out of the per-token decode step)
# ---------------------------------------------------------------------------
def prepare_decoder_params(raw, use_attention, compute_dtype=jnp.bfloat16):
    """Pre-transpose / pre-split / pre-concatenate weights, fold biases, pad emb_dim to
    a lane multiple and the vocab to the chosen fc tile, pick the fc vocab tile from the
    VMEM budget, and store the large operands (emb, fused gate weight, fc_w) in
    `compute_dtype` (bf16 by default: halves HBM weight streaming; MXU still acc f32).
    # TODO(synk): optional further step — int8 fc_w with per-tile scales (native MXU i8
    # on v5e/v6e); on v7x use fp8 or a per-tile bf16 dequant (no integer MXU path)."""
    H = raw["w_hh"].shape[1]
    E = raw["emb"].shape[1]
    V = raw["fc_w"].shape[0]
    E_pad = _round_up(E, 128)

    emb = raw["emb"]
    if E_pad != E:
        emb = jnp.pad(emb, ((0, 0), (0, E_pad - E)))

    wih_t = raw["w_ih"].T                       # (in_dim, 4H)
    whh_t = raw["w_hh"].T                       # (H, 4H)
    if use_attention:
        # kernel operand order is [h0 ; context ; embedded]; pad the embedded rows
        w_emb = jnp.pad(wih_t[:E], ((0, E_pad - E), (0, 0)))
        w_gate = jnp.concatenate([whh_t, wih_t[E:], w_emb], axis=0)   # (2H+E_pad, 4H)
    else:
        # kernel operand order is [h0 ; embedded]
        w_emb = jnp.pad(wih_t, ((0, E_pad - E), (0, 0)))
        w_gate = jnp.concatenate([whh_t, w_emb], axis=0)              # (H+E_pad, 4H)

    # fc_out tile: largest tile whose double-buffered weight stream fits ~1/4 of the
    # scoped-VMEM limit; pad the vocab once so every tile is full-width & lane-dense.
    wbytes = jnp.dtype(compute_dtype).itemsize
    tv = _pick_tile_v(H, V, wbytes, _VMEM_LIMIT // 4)
    V_pad = _round_up(V, tv)
    fc_w_t = raw["fc_w"].T                                            # (H, V)
    fc_b = raw["fc_b"].reshape(1, V)
    if V_pad != V:
        fc_w_t = jnp.pad(fc_w_t, ((0, 0), (0, V_pad - V)))
        fc_b = jnp.pad(fc_b, ((0, 0), (0, V_pad - V)))

    prepped = dict(
        emb=emb.astype(compute_dtype),
        w_gate=w_gate.astype(compute_dtype),
        b_gate=(raw["b_ih"] + raw["b_hh"]).reshape(1, 4 * H).astype(jnp.float32),
        fc_w_t=fc_w_t.astype(compute_dtype),                          # (H, V_pad)
        fc_b=fc_b.astype(jnp.float32),                                # (1, V_pad)
        vocab=V,
        tile_v=tv,
    )
    if use_attention:
        attn_wt = raw["attn_w"].T                                     # (2H, H)
        prepped.update(
            awh=attn_wt[:H].astype(jnp.float32),   # acts on the repeated hidden
            awe=attn_wt[H:].astype(jnp.float32),   # acts on the encoder outputs
            ab=raw["attn_b"].reshape(1, H).astype(jnp.float32),
            v=raw["v_w"].reshape(1, H).astype(jnp.float32),
        )
    return prepped


# ---------------------------------------------------------------------------
# once-per-source-sequence preparation: hoists the step-invariant encoder projection
# out of the per-token kernel, stores enc / eproj in the compute dtype, pads batch.
# ---------------------------------------------------------------------------
def precompute_encoder(prepped, encoder_outputs):
    B, S, H = encoder_outputs.shape
    enc32 = encoder_outputs.astype(jnp.float32)
    eproj = (enc32.reshape(B * S, H) @ prepped["awe"]
             + prepped["ab"]).reshape(B, S, H)
    dt = prepped["w_gate"].dtype
    enc_c = enc32.astype(dt)
    eproj_c = eproj.astype(dt)
    B_pad = _round_up(B, 8)
    if B_pad != B:
        pad3 = ((0, B_pad - B), (0, 0), (0, 0))
        enc_c = jnp.pad(enc_c, pad3)
        eproj_c = jnp.pad(eproj_c, pad3)
    return dict(enc=enc_c, eproj=eproj_c)


# ---------------------------------------------------------------------------
# per-token forward wrapper: embedding gather + ONE fused pallas_call
# ---------------------------------------------------------------------------
def decoder_forward(prepped, tokens, hidden, enc_cache=None, use_attention=False):
    """tokens: (B,) int32 ; hidden: (h, c) each (num_layers=1, B, H);
    enc_cache: output of precompute_encoder() when use_attention=True."""
    h0 = hidden[0][-1].astype(jnp.float32)       # (B, H)
    c0 = hidden[1][-1].astype(jnp.float32)       # (B, H)
    B, H = h0.shape
    V, tv = prepped["vocab"], prepped["tile_v"]
    V_pad = prepped["fc_w_t"].shape[1]
    B_pad = _round_up(B, 8)                      # pad batch to a sublane multiple

    # embedding: real row gather (B rows of E_pad) done by XLA outside the kernel
    # (dropout p=0.0 is an identity).
    x = jnp.take(prepped["emb"], tokens.astype(jnp.int32), axis=0)   # (B, E_pad)
    if B_pad != B:
        pad2 = ((0, B_pad - B), (0, 0))
        x, h0, c0 = jnp.pad(x, pad2), jnp.pad(h0, pad2), jnp.pad(c0, pad2)
    E_pad = x.shape[1]
    KG = prepped["w_gate"].shape[0]
    num_tiles = V_pad // tv

    cparams = pltpu.CompilerParams(
        # "arbitrary": cell runs at j==0 and its h1 is reused by every vocab tile
        dimension_semantics=("arbitrary",),
        vmem_limit_bytes=_VMEM_LIMIT)
    out_shape = (jax.ShapeDtypeStruct((B_pad, V_pad), jnp.float32),
                 jax.ShapeDtypeStruct((B_pad, H), jnp.float32),
                 jax.ShapeDtypeStruct((B_pad, H), jnp.float32))
    out_specs = (pl.BlockSpec((B_pad, tv), lambda j: (0, j)),        # pred tile
                 pl.BlockSpec((B_pad, H), lambda j: (0, 0)),         # h1 (VMEM-resident)
                 pl.BlockSpec((B_pad, H), lambda j: (0, 0)))         # c1 (VMEM-resident)

    # NOTE: in a real autoregressive decode loop with donated (h, c) buffers, add
    # input_output_aliases={1: 1, 2: 2} here to update the state in place.  Left off
    # in this demo because h0/c0 are reused afterwards by the reference check.
    if use_attention:
        enc, eproj = enc_cache["enc"], enc_cache["eproj"]
        S = enc.shape[1]
        pred, h1, c1 = pl.pallas_call(
            _attn_fused_kernel,
            out_shape=out_shape,
            grid=(num_tiles,),
            in_specs=[
                pl.BlockSpec((B_pad, E_pad), lambda j: (0, 0)),      # x
                pl.BlockSpec((B_pad, H), lambda j: (0, 0)),          # h0
                pl.BlockSpec((B_pad, H), lambda j: (0, 0)),          # c0
                pl.BlockSpec((B_pad, S, H), lambda j: (0, 0, 0)),    # enc  (compute dt)
                pl.BlockSpec((B_pad, S, H), lambda j: (0, 0, 0)),    # eproj (hoisted)
                pl.BlockSpec((H, H), lambda j: (0, 0)),              # attn W (hidden)
                pl.BlockSpec((1, H), lambda j: (0, 0)),              # attn v
                pl.BlockSpec((KG, 4 * H), lambda j: (0, 0)),         # fused gate W
                pl.BlockSpec((1, 4 * H), lambda j: (0, 0)),          # fused gate b
                # fc weight/bias stream through double-buffered VMEM tiles; sweep
                # pipeline_mode=pl.Buffered(3) here if xprof shows exposed DMA.
                pl.BlockSpec((H, tv), lambda j: (0, j)),             # fc_w tile
                pl.BlockSpec((1, tv), lambda j: (0, j)),             # fc_b tile
            ],
            out_specs=out_specs,
            compiler_params=cparams,
        )(x, h0, c0, enc, eproj,
          prepped["awh"], prepped["v"], prepped["w_gate"], prepped["b_gate"],
          prepped["fc_w_t"], prepped["fc_b"])
    else:
        pred, h1, c1 = pl.pallas_call(
            _plain_fused_kernel,
            out_shape=out_shape,
            grid=(num_tiles,),
            in_specs=[
                pl.BlockSpec((B_pad, E_pad), lambda j: (0, 0)),      # x
                pl.BlockSpec((B_pad, H), lambda j: (0, 0)),          # h0
                pl.BlockSpec((B_pad, H), lambda j: (0, 0)),          # c0
                pl.BlockSpec((KG, 4 * H), lambda j: (0, 0)),         # fused gate W
                pl.BlockSpec((1, 4 * H), lambda j: (0, 0)),          # fused gate b
                pl.BlockSpec((H, tv), lambda j: (0, j)),             # fc_w tile
                pl.BlockSpec((1, tv), lambda j: (0, j)),             # fc_b tile
            ],
            out_specs=out_specs,
            compiler_params=cparams,
        )(x, h0, c0, prepped["w_gate"], prepped["b_gate"],
          prepped["fc_w_t"], prepped["fc_b"])

    pred = pred[:B, :V]
    h1, c1 = h1[:B], c1[:B]
    return pred, (h1[None, :, :], c1[None, :, :])


# ---------------------------------------------------------------------------
# deterministic parameter init (PyTorch-like shapes / scales)
# ---------------------------------------------------------------------------
def init_decoder_params(key, output_dim, emb_dim, hidden_dim, use_attention, pad_idx=0):
    V, E, H = output_dim, emb_dim, hidden_dim
    in_dim = E + H if use_attention else E
    ks = jax.random.split(key, 10)

    def u(k, shape, fan_in):
        bound = 1.0 / math.sqrt(fan_in)
        return jax.random.uniform(k, shape, jnp.float32, -bound, bound)

    emb = jax.random.normal(ks[0], (V, E), jnp.float32)
    emb = emb.at[pad_idx].set(0.0)                      # padding_idx row
    return dict(
        emb=emb,
        attn_w=u(ks[1], (H, 2 * H), 2 * H), attn_b=u(ks[2], (H,), 2 * H),
        v_w=u(ks[3], (1, H), H),
        w_ih=u(ks[4], (4 * H, in_dim), H), w_hh=u(ks[5], (4 * H, H), H),
        b_ih=u(ks[6], (4 * H,), H), b_hh=u(ks[7], (4 * H,), H),
        fc_w=u(ks[8], (V, H), H), fc_b=u(ks[9], (V,), H),
    )


# ---------------------------------------------------------------------------
# pure-JAX reference mirroring the PyTorch forward exactly (for validation)
# ---------------------------------------------------------------------------
def decoder_reference(params, tokens, hidden, encoder_outputs=None, use_attention=False):
    h0, c0 = hidden[0][-1], hidden[1][-1]
    H = h0.shape[1]
    embedded = params["emb"][tokens]                    # (B, E), dropout p=0.0
    if use_attention:
        S = encoder_outputs.shape[1]
        hid_rep = jnp.repeat(h0[:, None, :], S, axis=1)                 # (B,S,H)
        cat = jnp.concatenate([hid_rep, encoder_outputs], axis=2)       # (B,S,2H)
        energy = jnp.tanh(cat @ params["attn_w"].T + params["attn_b"])
        attention = (energy @ params["v_w"].T)[..., 0]                  # (B,S)
        attn = jax.nn.softmax(attention, axis=1)
        context = jnp.einsum("bs,bsh->bh", attn, encoder_outputs)
        rnn_in = jnp.concatenate([embedded, context], axis=1)
    else:
        rnn_in = embedded
    gates = (rnn_in @ params["w_ih"].T + params["b_ih"]
             + h0 @ params["w_hh"].T + params["b_hh"])
    i = jax.nn.sigmoid(gates[:, :H]); f = jax.nn.sigmoid(gates[:, H:2 * H])
    g = jnp.tanh(gates[:, 2 * H:3 * H]); o = jax.nn.sigmoid(gates[:, 3 * H:4 * H])
    c1 = f * c0 + i * g
    h1 = o * jnp.tanh(c1)
    pred = h1 @ params["fc_w"].T + params["fc_b"]
    return pred, (h1[None], c1[None])


# ---------------------------------------------------------------------------
if __name__ == "__main__":
    # small but lane-friendly shapes: H multiple of 128; E=32 gets padded to 128
    B, V, E, H, S = 4, 512, 32, 128, 8      # batch, vocab, emb_dim, hidden_dim, src_len
    key = jax.random.PRNGKey(0)
    k_tok, k_h, k_c, k_enc, k_p1, k_p2 = jax.random.split(key, 6)

    tokens = jax.random.randint(k_tok, (B,), 0, V, dtype=jnp.int32)
    h0 = jax.random.normal(k_h, (1, B, H), jnp.float32)
    c0 = jax.random.normal(k_c, (1, B, H), jnp.float32)
    enc = jax.random.normal(k_enc, (B, S, H), jnp.float32)

    # ---- use_attention = False (module default), f32 weights for tight validation ----
    raw_plain = init_decoder_params(k_p1, V, E, H, use_attention=False)
    prepped_plain = prepare_decoder_params(raw_plain, use_attention=False,
                                           compute_dtype=jnp.float32)
    pred_p, (h1_p, c1_p) = decoder_forward(prepped_plain, tokens, (h0, c0),
                                           use_attention=False)
    jax.block_until_ready(pred_p)
    pred_ref, (h1_ref, c1_ref) = decoder_reference(raw_plain, tokens, (h0, c0),
                                                   use_attention=False)
    assert jnp.allclose(pred_p, pred_ref, atol=1e-4, rtol=1e-4)
    assert jnp.allclose(h1_p, h1_ref, atol=1e-4, rtol=1e-4)
    assert jnp.allclose(c1_p, c1_ref, atol=1e-4, rtol=1e-4)

    # ---- use_attention = True, f32 weights (softmax now uses an exact divide) ----
    raw_attn = init_decoder_params(k_p2, V, E, H, use_attention=True)
    prepped_attn = prepare_decoder_params(raw_attn, use_attention=True,
                                          compute_dtype=jnp.float32)
    enc_cache = precompute_encoder(prepped_attn, enc)   # once per source sequence
    pred_a, (h1_a, c1_a) = decoder_forward(prepped_attn, tokens, (h0, c0),
                                           enc_cache=enc_cache, use_attention=True)
    jax.block_until_ready(pred_a)
    pred_r2, (h1_r2, c1_r2) = decoder_reference(raw_attn, tokens, (h0, c0),
                                                encoder_outputs=enc, use_attention=True)
    assert jnp.allclose(pred_a, pred_r2, atol=1e-3, rtol=1e-3)
    assert jnp.allclose(h1_a, h1_r2, atol=1e-3, rtol=1e-3)
    assert jnp.allclose(c1_a, c1_r2, atol=1e-3, rtol=1e-3)

    # ---- default bf16 weight storage (emb / w_gate / fc_w / enc / eproj), f32 acc ----
    prepped_bf16 = prepare_decoder_params(raw_attn, use_attention=True)  # bf16 default
    enc_cache_bf16 = precompute_encoder(prepped_bf16, enc)
    pred_b, _ = decoder_forward(prepped_bf16, tokens, (h0, c0),
                                enc_cache=enc_cache_bf16, use_attention=True)
    jax.block_until_ready(pred_b)
    assert jnp.allclose(pred_b, pred_r2, atol=1e-1)     # bf16 weight rounding only

    print("KERNEL_OK")
</pallas_src>

<mosaic_0001>
module attributes {stable_mosaic.version = 11 : i64} {
  func.func @_plain_fused_kernel(%arg0: i32, %arg1: memref<8x128xf32, #tpu.memory_space<vmem>>, %arg2: memref<8x128xf32, #tpu.memory_space<vmem>>, %arg3: memref<8x128xf32, #tpu.memory_space<vmem>>, %arg4: memref<256x512xf32, #tpu.memory_space<vmem>>, %arg5: memref<1x512xf32, #tpu.memory_space<vmem>>, %arg6: memref<128x512xf32, #tpu.memory_space<vmem>>, %arg7: memref<1x512xf32, #tpu.memory_space<vmem>>, %arg8: memref<8x512xf32, #tpu.memory_space<vmem>>, %arg9: memref<8x128xf32, #tpu.memory_space<vmem>>, %arg10: memref<8x128xf32, #tpu.memory_space<vmem>>) attributes {dimension_semantics = [#tpu.dimension_semantics<arbitrary>], iteration_bounds = array<i64: 1>, scalar_prefetch = 0 : i64, scratch_operands = 0 : i64, tpu.core_type = #tpu.core_type<tc>, window_params = [{pipeline_mode = #tpu.pipeline_mode<synchronous>, transform_indices = @transform_0, window_bounds = array<i64: 8, 128>}, {pipeline_mode = #tpu.pipeline_mode<synchronous>, transform_indices = @transform_1, window_bounds = array<i64: 8, 128>}, {pipeline_mode = #tpu.pipeline_mode<synchronous>, transform_indices = @transform_2, window_bounds = array<i64: 8, 128>}, {pipeline_mode = #tpu.pipeline_mode<synchronous>, transform_indices = @transform_3, window_bounds = array<i64: 256, 512>}, {pipeline_mode = #tpu.pipeline_mode<synchronous>, transform_indices = @transform_4, window_bounds = array<i64: 1, 512>}, {transform_indices = @transform_5, window_bounds = array<i64: 128, 512>}, {transform_indices = @transform_6, window_bounds = array<i64: 1, 512>}, {transform_indices = @transform_7, window_bounds = array<i64: 8, 512>}, {pipeline_mode = #tpu.pipeline_mode<synchronous>, transform_indices = @transform_8, window_bounds = array<i64: 8, 128>}, {pipeline_mode = #tpu.pipeline_mode<synchronous>, transform_indices = @transform_9, window_bounds = array<i64: 8, 128>}]} {
    %c0_i32 = arith.constant 0 : i32
    %0 = arith.cmpi eq, %arg0, %c0_i32 : i32
    %1 = arith.extui %0 : i1 to i32
    %c0_i32_0 = arith.constant 0 : i32
    %2 = arith.cmpi ne, %1, %c0_i32_0 : i32
    scf.if %2 {
      %c0_8 = arith.constant 0 : index
      %c0_9 = arith.constant 0 : index
      %10 = vector.load %arg2[%c0_8, %c0_9] : memref<8x128xf32, #tpu.memory_space<vmem>>, vector<8x128xf32>
      %c0_10 = arith.constant 0 : index
      %c0_11 = arith.constant 0 : index
      %11 = vector.load %arg1[%c0_10, %c0_11] : memref<8x128xf32, #tpu.memory_space<vmem>>, vector<8x128xf32>
      %12 = tpu.concatenate %10, %11 in 1 : vector<8x128xf32>, vector<8x128xf32> -> vector<8x256xf32>
      %c0_12 = arith.constant 0 : index
      %c0_13 = arith.constant 0 : index
      %13 = vector.load %arg4[%c0_12, %c0_13] : memref<256x512xf32, #tpu.memory_space<vmem>>, vector<256x512xf32>
      %cst_14 = arith.constant dense<0.000000e+00> : vector<8x512xf32>
      %14 = tpu.matmul %12, %13, %cst_14 {dimension_numbers = #tpu.dot_dimension_numbers<[1], [0], [0], [1], [0, 0, 1, 1], [], []>} : vector<8x256xf32>, vector<256x512xf32>, vector<8x512xf32> -> vector<8x512xf32>
      %c0_15 = arith.constant 0 : index
      %c0_16 = arith.constant 0 : index
      %15 = vector.load %arg5[%c0_15, %c0_16] : memref<1x512xf32, #tpu.memory_space<vmem>>, vector<1x512xf32>
      %16 = vector.broadcast %15 : vector<1x512xf32> to vector<8x512xf32>
      %17 = arith.addf %14, %16 : vector<8x512xf32>
      %c0_17 = arith.constant 0 : index
      %c0_18 = arith.constant 0 : index
      %18 = vector.load %arg3[%c0_17, %c0_18] : memref<8x128xf32, #tpu.memory_space<vmem>>, vector<8x128xf32>
      %19 = vector.extract_strided_slice %17 {offsets = [0, 0], sizes = [8, 128], strides = [1, 1]} : vector<8x512xf32> to vector<8x128xf32>
      %20 = arith.negf %19 : vector<8x128xf32>
      %21 = math.exp %20 : vector<8x128xf32>
      %cst_19 = arith.constant 1.000000e+00 : f32
      %22 = vector.broadcast %cst_19 : f32 to vector<8x128xf32>
      %23 = arith.addf %22, %21 : vector<8x128xf32>
      %24 = arith.divf %22, %23 : vector<8x128xf32>
      %25 = vector.extract_strided_slice %17 {offsets = [0, 128], sizes = [8, 128], strides = [1, 1]} : vector<8x512xf32> to vector<8x128xf32>
      %26 = arith.negf %25 : vector<8x128xf32>
      %27 = math.exp %26 : vector<8x128xf32>
      %cst_20 = arith.constant 1.000000e+00 : f32
      %28 = vector.broadcast %cst_20 : f32 to vector<8x128xf32>
      %29 = arith.addf %28, %27 : vector<8x128xf32>
      %30 = arith.divf %28, %29 : vector<8x128xf32>
      %31 = vector.extract_strided_slice %17 {offsets = [0, 256], sizes = [8, 128], strides = [1, 1]} : vector<8x512xf32> to vector<8x128xf32>
      %32 = math.tanh %31 : vector<8x128xf32>
      %33 = vector.extract_strided_slice %17 {offsets = [0, 384], sizes = [8, 128], strides = [1, 1]} : vector<8x512xf32> to vector<8x128xf32>
      %34 = arith.negf %33 : vector<8x128xf32>
      %35 = math.exp %34 : vector<8x128xf32>
      %cst_21 = arith.constant 1.000000e+00 : f32
      %36 = vector.broadcast %cst_21 : f32 to vector<8x128xf32>
      %37 = arith.addf %36, %35 : vector<8x128xf32>
      %38 = arith.divf %36, %37 : vector<8x128xf32>
      %39 = arith.mulf %30, %18 : vector<8x128xf32>
      %40 = arith.mulf %24, %32 : vector<8x128xf32>
      %41 = arith.addf %39, %40 : vector<8x128xf32>
      %42 = math.tanh %41 : vector<8x128xf32>
      %43 = arith.mulf %38, %42 : vector<8x128xf32>
      %c0_22 = arith.constant 0 : index
      %c0_23 = arith.constant 0 : index
      %44 = vector.load %arg9[%c0_22, %c0_23] : memref<8x128xf32, #tpu.memory_space<vmem>>, vector<8x128xf32>
      tpu.vector_store %arg9[%c0_22, %c0_23], %43 {strides = array<i32>} : memref<8x128xf32, #tpu.memory_space<vmem>>, vector<8x128xf32>,
      %c0_24 = arith.constant 0 : index
      %c0_25 = arith.constant 0 : index
      %45 = vector.load %arg10[%c0_24, %c0_25] : memref<8x128xf32, #tpu.memory_space<vmem>>, vector<8x128xf32>
      tpu.vector_store %arg10[%c0_24, %c0_25], %41 {strides = array<i32>} : memref<8x128xf32, #tpu.memory_space<vmem>>, vector<8x128xf32>,
    } else {
    }
    %c0 = arith.constant 0 : index
    %c0_1 = arith.constant 0 : index
    %3 = vector.load %arg9[%c0, %c0_1] : memref<8x128xf32, #tpu.memory_space<vmem>>, vector<8x128xf32>
    %c0_2 = arith.constant 0 : index
    %c0_3 = arith.constant 0 : index
    %4 = vector.load %arg6[%c0_2, %c0_3] : memref<128x512xf32, #tpu.memory_space<vmem>>, vector<128x512xf32>
    %cst = arith.constant dense<0.000000e+00> : vector<8x512xf32>
    %5 = tpu.matmul %3, %4, %cst {dimension_numbers = #tpu.dot_dimension_numbers<[1], [0], [0], [1], [0, 0, 1, 1], [], []>} : vector<8x128xf32>, vector<128x512xf32>, vector<8x512xf32> -> vector<8x512xf32>
    %c0_4 = arith.constant 0 : index
    %c0_5 = arith.constant 0 : index
    %6 = vector.load %arg7[%c0_4, %c0_5] : memref<1x512xf32, #tpu.memory_space<vmem>>, vector<1x512xf32>
    %7 = vector.broadcast %6 : vector<1x512xf32> to vector<8x512xf32>
    %8 = arith.addf %5, %7 : vector<8x512xf32>
    %c0_6 = arith.constant 0 : index
    %c0_7 = arith.constant 0 : index
    %9 = vector.load %arg8[%c0_6, %c0_7] : memref<8x512xf32, #tpu.memory_space<vmem>>, vector<8x512xf32>
    tpu.vector_store %arg8[%c0_6, %c0_7], %8 {strides = array<i32>} : memref<8x512xf32, #tpu.memory_space<vmem>>, vector<8x512xf32>,
    return
  }
  func.func @transform_0(%arg0: i32) -> (i32, i32) {
    %c0_i32 = arith.constant 0 : i32
    %c0_i32_0 = arith.constant 0 : i32
    %c0_i32_1 = arith.constant 0 : i32
    return %c0_i32, %c0_i32_0 : i32, i32
  }
  func.func @transform_1(%arg0: i32) -> (i32, i32) {
    %c0_i32 = arith.constant 0 : i32
    %c0_i32_0 = arith.constant 0 : i32
    %c0_i32_1 = arith.constant 0 : i32
    return %c0_i32, %c0_i32_0 : i32, i32
  }
  func.func @transform_2(%arg0: i32) -> (i32, i32) {
    %c0_i32 = arith.constant 0 : i32
    %c0_i32_0 = arith.constant 0 : i32
    %c0_i32_1 = arith.constant 0 : i32
    return %c0_i32, %c0_i32_0 : i32, i32
  }
  func.func @transform_3(%arg0: i32) -> (i32, i32) {
    %c0_i32 = arith.constant 0 : i32
    %c0_i32_0 = arith.constant 0 : i32
    %c0_i32_1 = arith.constant 0 : i32
    return %c0_i32, %c0_i32_0 : i32, i32
  }
  func.func @transform_4(%arg0: i32) -> (i32, i32) {
    %c0_i32 = arith.constant 0 : i32
    %c0_i32_0 = arith.constant 0 : i32
    %c0_i32_1 = arith.constant 0 : i32
    return %c0_i32, %c0_i32_0 : i32, i32
  }
  func.func @transform_5(%arg0: i32) -> (i32, i32) {
    %c0_i32 = arith.constant 0 : i32
    %c0_i32_0 = arith.constant 0 : i32
    return %c0_i32, %arg0 : i32, i32
  }
  func.func @transform_6(%arg0: i32) -> (i32, i32) {
    %c0_i32 = arith.constant 0 : i32
    %c0_i32_0 = arith.constant 0 : i32
    return %c0_i32, %arg0 : i32, i32
  }
  func.func @transform_7(%arg0: i32) -> (i32, i32) {
    %c0_i32 = arith.constant 0 : i32
    %c0_i32_0 = arith.constant 0 : i32
    return %c0_i32, %arg0 : i32, i32
  }
  func.func @transform_8(%arg0: i32) -> (i32, i32) {
    %c0_i32 = arith.constant 0 : i32
    %c0_i32_0 = arith.constant 0 : i32
    %c0_i32_1 = arith.constant 0 : i32
    return %c0_i32, %c0_i32_0 : i32, i32
  }
  func.func @transform_9(%arg0: i32) -> (i32, i32) {
    %c0_i32 = arith.constant 0 : i32
    %c0_i32_0 = arith.constant 0 : i32
    %c0_i32_1 = arith.constant 0 : i32
    return %c0_i32, %c0_i32_0 : i32, i32
  }
}

</mosaic_0001>

<bundles_post_ra>
// kernel: tpu_custom_call.1
= control target key start
LH: loop header
LB: loop body
LE: loop exit
PB: predicated region body
PF: predicated region fallthrough
CT: control target
= control target key end

     0   :  { %15 = vsyncpa [#allocation3], 0  ;;  %s1301_s0 = inlined_call_operand.hbm [shape: f32[8,128], index: 0, kind: input, shape index: {}]   ;;  %s1302_s1 = inlined_call_operand.hbm [shape: f32[8,128], index: 1, kind: input, shape index: {}]   ;;  %s1303_s2 = inlined_call_operand.hbm [shape: f32[8,128], index: 2, kind: input, shape index: {}]   ;;  %s1304_s3 = inlined_call_operand.hbm [shape: f32[256,512], index: 3, kind: input, shape index: {}]   ;;  %s1305_s4 = inlined_call_operand.vmem [shape: f32[1,512], index: 4, kind: input, shape index: {}]   ;;  %s1306_s5 = inlined_call_operand.hbm [shape: f32[128,512], index: 5, kind: input, shape index: {}]   ;;  %s1307_s6 = inlined_call_operand.vmem [shape: f32[1,512], index: 6, kind: input, shape index: {}]   ;;  %s1308_s7 = inlined_call_operand.hbm [shape: f32[8,512], index: 7, kind: output, shape index: {0}]   ;;  %s1309_s8 = inlined_call_operand.hbm [shape: f32[8,128], index: 8, kind: output, shape index: {1}]   ;;  %s1310_s9 = inlined_call_operand.hbm [shape: f32[8,128], index: 9, kind: output, shape index: {2}]  }
   0x1   :  { %16 = vsyncpa [#allocation6], 0 }
   0x2   :  { %17 = vsyncpa [#allocation9], 0 }
   0x3   :  { %18 = vsyncpa [#allocation4], 0 }
   0x4   :  { %19 = vsyncpa [#allocation13], 0  ;;  %s1103_s30 = smov [#allocation5]   ;;  %s1104_s11 = smov [#allocation8]  }
   0x5   :  { %s36_s10 = sshll.u32 %s1103_s30, 4  ;;  %s55_s12 = sshll.u32 %s1104_s11, 4  ;;  %s37_s10 = int_to_ptr.vmem [resolvable:$true] %s36_s10  ;;  %s1164_s12 = int_to_ptr.vmem [resolvable:$true] %s55_s12 }
   0x6   :  { %s917_s15 = scalar_lea.hbm %s1302_s1, 128 }
   0x7   :  { %p918_p0 = scmp.ne.s32.totalorder %s1302_s1, %s917_s15  ;;  %p921_p1 = scmp.lt.u32.totalorder %s917_s15, %s1302_s1 }
   0x9   :  { %p923_p2 = pnand %p921_p1, %p918_p0 }
   0xb   :  { %926 = shalt.err (!%p923_p2)
}
   0xc   :  { %s927_s20 = scalar_lea.vmem %s37_s10, 128  ;;  %p932_p4 = scmp.lt.s32.totalorder %s37_s10, %s37_s10 }
   0xd   :  { %p928_p3 = scmp.ne.s32.totalorder %s37_s10, %s927_s20  ;;  %p933_p5 = scmp.lt.s32.totalorder %s927_s20, %s927_s20 }
   0xf   :  { %p934_p6 = por %p933_p5, %p932_p4 }
  0x11   :  { %p935_p7 = pnand %p934_p6, %p928_p3 }
  0x13   :  { %938 = shalt.err (!%p935_p7)
}
  0x14   :  { %39 = dma.hbm_to_vmem [thread:$0]  %s1302_s1, 128, %s37_s10, [#allocation6]  }
  0x15   :  { %s939_s25 = scalar_lea.hbm %s1304_s3, 16384 }
  0x16   :  { %p940_p8 = scmp.ne.s32.totalorder %s1304_s3, %s939_s25  ;;  %p943_p9 = scmp.lt.u32.totalorder %s939_s25, %s1304_s3 }
  0x18   :  { %p945_p10 = pnand %p943_p9, %p940_p8 }
  0x1a   :  { %948 = shalt.err (!%p945_p10)
}
  0x1b   :  { %s949_s30 = scalar_lea.vmem %s1164_s12, 16384  ;;  %p954_p12 = scmp.lt.s32.totalorder %s1164_s12, %s1164_s12 }
  0x1c   :  { %p950_p11 = scmp.ne.s32.totalorder %s1164_s12, %s949_s30  ;;  %p955_p13 = scmp.lt.s32.totalorder %s949_s30, %s949_s30 }
  0x1e   :  { %p956_p0 = por %p955_p13, %p954_p12 }
  0x20   :  { %p957_p1 = pnand %p956_p0, %p950_p11 }
  0x22   :  { %960 = shalt.err (!%p957_p1)
}
  0x23   :  { %s1105_s1 = smov 512   ;;  %s1106_s10 = smov 32  }
  0x24   :  { %61 = dma.hbm_to_vmem [thread:$0]  %s1304_s3, 16384, %s1164_s12, [#allocation9], %s1105_s1, %s1105_s1, %s1106_s10  }
  0x25   :  { %s1107_s14 = smov [#allocation2]   ;;  %s1108_s16 = smov [#allocation7]  }
  0x26   :  { %s26_s15 = sshll.u32 %s1107_s14, 4  ;;  %s46_s17 = sshll.u32 %s1108_s16, 4  ;;  %s27_s15 = int_to_ptr.vmem [resolvable:$true] %s26_s15  ;;  %s47_s17 = int_to_ptr.vmem [resolvable:$true] %s46_s17 }
  0x27   :  { %s961_s20 = scalar_lea.hbm %s1301_s0, 128 }
  0x28   :  { %p962_p2 = scmp.ne.s32.totalorder %s1301_s0, %s961_s20  ;;  %p965_p3 = scmp.lt.u32.totalorder %s961_s20, %s1301_s0 }
  0x2a   :  { %p967_p4 = pnand %p965_p3, %p962_p2 }
  0x2c   :  { %970 = shalt.err (!%p967_p4)
}
  0x2d   :  { %s971_s3 = scalar_lea.vmem %s27_s15, 128  ;;  %p976_p6 = scmp.lt.s32.totalorder %s27_s15, %s27_s15 }
  0x2e   :  { %p972_p5 = scmp.ne.s32.totalorder %s27_s15, %s971_s3  ;;  %p977_p7 = scmp.lt.s32.totalorder %s971_s3, %s971_s3 }
  0x30   :  { %p978_p8 = por %p977_p7, %p976_p6 }
  0x32   :  { %p979_p9 = pnand %p978_p8, %p972_p5 }
  0x34   :  { %982 = shalt.err (!%p979_p9)
}
  0x35   :  { %29 = dma.hbm_to_vmem [thread:$0]  %s1301_s0, 128, %s27_s15, [#allocation3]  }
  0x36   :  { %s983_s28 = scalar_lea.hbm %s1303_s2, 128 }
  0x37   :  { %p984_p10 = scmp.ne.s32.totalorder %s1303_s2, %s983_s28  ;;  %p987_p11 = scmp.lt.u32.totalorder %s983_s28, %s1303_s2 }
  0x39   :  { %p989_p12 = pnand %p987_p11, %p984_p10 }
  0x3b   :  { %992 = shalt.err (!%p989_p12)
}
  0x3c   :  { %s993_s14 = scalar_lea.vmem %s47_s17, 128  ;;  %p998_p0 = scmp.lt.s32.totalorder %s47_s17, %s47_s17 }
  0x3d   :  { %p994_p13 = scmp.ne.s32.totalorder %s47_s17, %s993_s14  ;;  %p999_p1 = scmp.lt.s32.totalorder %s993_s14, %s993_s14 }
  0x3f   :  { %p1000_p2 = por %p999_p1, %p998_p0 }
  0x41   :  { %p1001_p3 = pnand %p1000_p2, %p994_p13 }
  0x43   :  { %1004 = shalt.err (!%p1001_p3)
}
  0x44   :  { %49 = dma.hbm_to_vmem [thread:$0]  %s1303_s2, 128, %s47_s17, [#allocation6]  }
  0x45   :  { %s1109_s16 = smov [#allocation10]   ;;  %s1005_s21 = scalar_lea.hbm %s1306_s5, 8192 }
  0x46   :  { %s69_s18 = sshll.u32 %s1109_s16, 4  ;;  %p1006_p4 = scmp.ne.s32.totalorder %s1306_s5, %s1005_s21  ;;  %s70_s18 = int_to_ptr.vmem [resolvable:$true] %s69_s18 }
  0x47   :  { %p1009_p5 = scmp.lt.u32.totalorder %s1005_s21, %s1306_s5 }
  0x49   :  { %p1011_p6 = pnand %p1009_p5, %p1006_p4 }
  0x4b   :  { %1014 = shalt.err (!%p1011_p6)
}
  0x4c   :  { %s1015_s12 = scalar_lea.vmem %s70_s18, 8192  ;;  %p1020_p8 = scmp.lt.s32.totalorder %s70_s18, %s70_s18 }
  0x4d   :  { %p1016_p7 = scmp.ne.s32.totalorder %s70_s18, %s1015_s12  ;;  %p1021_p9 = scmp.lt.s32.totalorder %s1015_s12, %s1015_s12 }
  0x4f   :  { %p1022_p10 = por %p1021_p9, %p1020_p8 }
  0x51   :  { %p1023_p11 = pnand %p1022_p10, %p1016_p7 }
  0x53   :  { %1026 = shalt.err (!%p1023_p11)
}
  0x54   :  { %75 = dma.hbm_to_vmem [thread:$0]  %s1306_s5, 8192, %s70_s18, [#allocation9], %s1105_s1, %s1105_s1, %s1106_s10  }
  0x55   :  { %1093 = dma.done.wait [#allocation3], 128  }
  0x56   :  { %1094 = vsyncadd [#allocation3], 4294967168 }
  0x57   :  { %1095 = dma.done.wait [#allocation6], 256  }
  0x58   :  { %1096 = vsyncadd [#allocation6], 4294967040 }
  0x59   :  { %1097 = dma.done.wait [#allocation9], 24576  }
  0x5a   :  { %1098 = vsyncadd [#allocation9], 4294942720  ;;  %v100_v0 = vld [vmem:[#allocation8 + $0x8] sm:$0xff]  ;;  %v99_v2 = vld [vmem:[#allocation8] sm:$0xff] }
  0x5b   :  { %v104_v1 = vld [vmem:[#allocation8 + $0x28] sm:$0xff]  ;;  %v103_v4 = vld [vmem:[#allocation8 + $0x20] sm:$0xff]  ;;  %v102_v18 = vld [vmem:[#allocation8 + $0x18] sm:$0xff] }
  0x5c   :  { %v698_v3 = vpack.c.bf16 %v104_v1, %v100_v0  ;;  %v108_v5 = vld [vmem:[#allocation8 + $0x48] sm:$0xff]  ;;  %v700_v7 = vpack.c.bf16 %v103_v4, %v99_v2  ;;  %v107_v9 = vld [vmem:[#allocation8 + $0x40] sm:$0xff]  ;;  %v106_v19 = vld [vmem:[#allocation8 + $0x38] sm:$0xff] }
  0x5d   :  { %v112_v6 = vld [vmem:[#allocation8 + $0x68] sm:$0xff]  ;;  %v111_v10 = vld [vmem:[#allocation8 + $0x60] sm:$0xff]  ;;  %v762_v21 = vpack.c.bf16 %v106_v19, %v102_v18  ;;  %v101_v22 = vld [vmem:[#allocation8 + $0x10] sm:$0xff] }
  0x5e   :  { %v702_v8 = vpack.c.bf16 %v112_v6, %v108_v5  ;;  %v116_v11 = vld [vmem:[#allocation8 + $0x88] sm:$0xff]  ;;  %699 = vmatprep.subr.bf16.mxu0 %v698_v3  ;;  %v704_v13 = vpack.c.bf16 %v111_v10, %v107_v9  ;;  %v115_v14 = vld [vmem:[#allocation8 + $0x80] sm:$0xff]  ;;  %v105_v23 = vld [vmem:[#allocation8 + $0x30] sm:$0xff] }
  0x5f   :  { %v120_v12 = vld [vmem:[#allocation8 + $0xa8] sm:$0xff]  ;;  %701 = vmatpush1.bf16.msra.mxu0 %v700_v7  ;;  %v119_v15 = vld [vmem:[#allocation8 + $0xa0] sm:$0xff]  ;;  %v764_v24 = vpack.c.bf16 %v105_v23, %v101_v22  ;;  %763 = vmatprep.subr.bf16.mxu1 %v762_v21  ;;  %v110_v26 = vld [vmem:[#allocation8 + $0x58] sm:$0xff] }
  0x60   :  { %703 = vmatprep.subr.bf16.mxu0 %v702_v8  ;;  %v706_v16 = vpack.c.bf16 %v120_v12, %v116_v11  ;;  %v124_v17 = vld [vmem:[#allocation8 + $0xc8] sm:$0xff]  ;;  %v708_v25 = vpack.c.bf16 %v119_v15, %v115_v14  ;;  %v114_v27 = vld [vmem:[#allocation8 + $0x78] sm:$0xff]  ;;  %v109_v28 = vld [vmem:[#allocation8 + $0x50] sm:$0xff] }
  0x61   :  { %v128_v20 = vld [vmem:[#allocation8 + $0xe8] sm:$0xff]  ;;  %v123_v30 = vld [vmem:[#allocation8 + $0xc0] sm:$0xff]  ;;  %765 = vmatpush1.bf16.msra.mxu1 %v764_v24  ;;  %v766_v32 = vpack.c.bf16 %v114_v27, %v110_v26  ;;  %v113_v33 = vld [vmem:[#allocation8 + $0x70] sm:$0xff] }
  0x62   :  { %v710_v29 = vpack.c.bf16 %v128_v20, %v124_v17  ;;  %v127_v31 = vld [vmem:[#allocation8 + $0xe0] sm:$0xff]  ;;  %v132_v34 = vld [vmem:[#allocation8 + $0x108] sm:$0xff]  ;;  %v768_v36 = vpack.c.bf16 %v113_v33, %v109_v28  ;;  %v118_v37 = vld [vmem:[#allocation8 + $0x98] sm:$0xff] }
  0x63   :  { %705 = vmatpush1.bf16.msra.mxu0 %v704_v13  ;;  %v136_v35 = vld [vmem:[#allocation8 + $0x128] sm:$0xff]  ;;  %767 = vmatprep.subr.bf16.mxu1 %v766_v32  ;;  %v122_v38 = vld [vmem:[#allocation8 + $0xb8] sm:$0xff]  ;;  %v117_v39 = vld [vmem:[#allocation8 + $0x90] sm:$0xff]  ;;  %v712_v41 = vpack.c.bf16 %v127_v31, %v123_v30 }
  0x64   :  { %707 = vmatprep.subr.bf16.mxu0 %v706_v16  ;;  %v121_v40 = vld [vmem:[#allocation8 + $0xb0] sm:$0xff]  ;;  %v131_v42 = vld [vmem:[#allocation8 + $0x100] sm:$0xff]  ;;  %v770_v44 = vpack.c.bf16 %v122_v38, %v118_v37  ;;  %v714_v45 = vpack.c.bf16 %v136_v35, %v132_v34  ;;  %v140_v46 = vld [vmem:[#allocation8 + $0x148] sm:$0xff] }
  0x65   :  { %v135_v43 = vld [vmem:[#allocation8 + $0x120] sm:$0xff]  ;;  %769 = vmatpush1.bf16.msra.mxu1 %v768_v36  ;;  %v772_v47 = vpack.c.bf16 %v121_v40, %v117_v39  ;;  %v126_v48 = vld [vmem:[#allocation8 + $0xd8] sm:$0xff]  ;;  %v144_v50 = vld [vmem:[#allocation8 + $0x168] sm:$0xff] }
  0x66   :  { %v130_v49 = vld [vmem:[#allocation8 + $0xf8] sm:$0xff]  ;;  %771 = vmatprep.subr.bf16.mxu1 %v770_v44  ;;  %v125_v52 = vld [vmem:[#allocation8 + $0xd0] sm:$0xff]  ;;  %v716_v54 = vpack.c.bf16 %v135_v43, %v131_v42  ;;  %v718_v57 = vpack.c.bf16 %v144_v50, %v140_v46  ;;  %v139_v58 = vld [vmem:[#allocation8 + $0x140] sm:$0xff] }
  0x67   :  { %709 = vmatpush1.bf16.msra.mxu0 %v708_v25  ;;  %v774_v51 = vpack.c.bf16 %v130_v49, %v126_v48  ;;  %v129_v53 = vld [vmem:[#allocation8 + $0xf0] sm:$0xff]  ;;  %v134_v55 = vld [vmem:[#allocation8 + $0x118] sm:$0xff]  ;;  %v143_v59 = vld [vmem:[#allocation8 + $0x160] sm:$0xff] }
  0x68   :  { %711 = vmatprep.subr.bf16.mxu0 %v710_v29  ;;  %v138_v56 = vld [vmem:[#allocation8 + $0x138] sm:$0xff]  ;;  %v148_v60 = vld [vmem:[#allocation8 + $0x188] sm:$0xff]  ;;  %v776_v61 = vpack.c.bf16 %v129_v53, %v125_v52  ;;  %v133_v0 = vld [vmem:[#allocation8 + $0x110] sm:$0xff]  ;;  %v720_v4 = vpack.c.bf16 %v143_v59, %v139_v58 }
  0x69   :  { %773 = vmatpush1.bf16.msra.mxu1 %v772_v47  ;;  %v152_v62 = vld [vmem:[#allocation8 + $0x1a8] sm:$0xff]  ;;  %v778_v63 = vpack.c.bf16 %v138_v56, %v134_v55  ;;  %v137_v1 = vld [vmem:[#allocation8 + $0x130] sm:$0xff]  ;;  %v142_v2 = vld [vmem:[#allocation8 + $0x158] sm:$0xff] }
  0x6a   :  { %775 = vmatprep.subr.bf16.mxu1 %v774_v51  ;;  %v146_v3 = vld [vmem:[#allocation8 + $0x178] sm:$0xff]  ;;  %v722_v5 = vpack.c.bf16 %v152_v62, %v148_v60  ;;  %v147_v6 = vld [vmem:[#allocation8 + $0x180] sm:$0xff]  ;;  %v156_v8 = vld [vmem:[#allocation8 + $0x1c8] sm:$0xff]  ;;  %v780_v9 = vpack.c.bf16 %v137_v1, %v133_v0 }
  0x6b   :  { %713 = vmatpush1.bf16.msra.mxu0 %v712_v41  ;;  %v151_v7 = vld [vmem:[#allocation8 + $0x1a0] sm:$0xff]  ;;  %v160_v10 = vld [vmem:[#allocation8 + $0x1e8] sm:$0xff]  ;;  %v782_v11 = vpack.c.bf16 %v146_v3, %v142_v2  ;;  %v141_v12 = vld [vmem:[#allocation8 + $0x150] sm:$0xff] }
  0x6c   :  { %715 = vmatprep.subr.bf16.mxu0 %v714_v45  ;;  %v145_v13 = vld [vmem:[#allocation8 + $0x170] sm:$0xff]  ;;  %v150_v14 = vld [vmem:[#allocation8 + $0x198] sm:$0xff]  ;;  %v724_v16 = vpack.c.bf16 %v151_v7, %v147_v6  ;;  %v726_v17 = vpack.c.bf16 %v160_v10, %v156_v8  ;;  %v155_v18 = vld [vmem:[#allocation8 + $0x1c0] sm:$0xff] }
  0x6d   :  { %777 = vmatpush1.bf16.msra.mxu1 %v776_v61  ;;  %v154_v15 = vld [vmem:[#allocation8 + $0x1b8] sm:$0xff]  ;;  %v159_v19 = vld [vmem:[#allocation8 + $0x1e0] sm:$0xff]  ;;  %v164_v20 = vld [vmem:[#allocation8 + $0x208] sm:$0xff]  ;;  %v784_v21 = vpack.c.bf16 %v145_v13, %v141_v12 }
  0x6e   :  { %779 = vmatprep.subr.bf16.mxu1 %v778_v63  ;;  %v168_v22 = vld [vmem:[#allocation8 + $0x228] sm:$0xff]  ;;  %v786_v23 = vpack.c.bf16 %v154_v15, %v150_v14  ;;  %v149_v24 = vld [vmem:[#allocation8 + $0x190] sm:$0xff]  ;;  %v158_v26 = vld [vmem:[#allocation8 + $0x1d8] sm:$0xff]  ;;  %v728_v28 = vpack.c.bf16 %v159_v19, %v155_v18 }
  0x6f   :  { %717 = vmatpush1.bf16.msra.mxu0 %v716_v54  ;;  %v153_v25 = vld [vmem:[#allocation8 + $0x1b0] sm:$0xff]  ;;  %v162_v27 = vld [vmem:[#allocation8 + $0x1f8] sm:$0xff]  ;;  %v730_v29 = vpack.c.bf16 %v168_v22, %v164_v20  ;;  %v163_v30 = vld [vmem:[#allocation8 + $0x200] sm:$0xff] }
  0x70   :  { %719 = vmatprep.subr.bf16.mxu0 %v718_v57  ;;  %v167_v31 = vld [vmem:[#allocation8 + $0x220] sm:$0xff]  ;;  %v172_v32 = vld [vmem:[#allocation8 + $0x248] sm:$0xff]  ;;  %v788_v33 = vpack.c.bf16 %v153_v25, %v149_v24  ;;  %v790_v35 = vpack.c.bf16 %v162_v27, %v158_v26  ;;  %v157_v36 = vld [vmem:[#allocation8 + $0x1d0] sm:$0xff] }
  0x71   :  { %781 = vmatpush1.bf16.msra.mxu1 %v780_v9  ;;  %v176_v34 = vld [vmem:[#allocation8 + $0x268] sm:$0xff]  ;;  %v161_v37 = vld [vmem:[#allocation8 + $0x1f0] sm:$0xff]  ;;  %v166_v38 = vld [vmem:[#allocation8 + $0x218] sm:$0xff]  ;;  %v732_v40 = vpack.c.bf16 %v167_v31, %v163_v30 }
  0x72   :  { %783 = vmatprep.subr.bf16.mxu1 %v782_v11  ;;  %v170_v39 = vld [vmem:[#allocation8 + $0x238] sm:$0xff]  ;;  %v734_v41 = vpack.c.bf16 %v176_v34, %v172_v32  ;;  %v171_v42 = vld [vmem:[#allocation8 + $0x240] sm:$0xff]  ;;  %v180_v44 = vld [vmem:[#allocation8 + $0x288] sm:$0xff]  ;;  %v792_v45 = vpack.c.bf16 %v161_v37, %v157_v36 }
  0x73   :  { %721 = vmatpush1.bf16.msra.mxu0 %v720_v4  ;;  %v175_v43 = vld [vmem:[#allocation8 + $0x260] sm:$0xff]  ;;  %v184_v46 = vld [vmem:[#allocation8 + $0x2a8] sm:$0xff]  ;;  %v794_v47 = vpack.c.bf16 %v170_v39, %v166_v38  ;;  %v165_v48 = vld [vmem:[#allocation8 + $0x210] sm:$0xff] }
  0x74   :  { %723 = vmatprep.subr.bf16.mxu0 %v722_v5  ;;  %v169_v49 = vld [vmem:[#allocation8 + $0x230] sm:$0xff]  ;;  %v174_v50 = vld [vmem:[#allocation8 + $0x258] sm:$0xff]  ;;  %v736_v52 = vpack.c.bf16 %v175_v43, %v171_v42  ;;  %v179_v53 = vld [vmem:[#allocation8 + $0x280] sm:$0xff]  ;;  %v738_v54 = vpack.c.bf16 %v184_v46, %v180_v44 }
  0x75   :  { %785 = vmatpush1.bf16.msra.mxu1 %v784_v21  ;;  %v178_v51 = vld [vmem:[#allocation8 + $0x278] sm:$0xff]  ;;  %v183_v55 = vld [vmem:[#allocation8 + $0x2a0] sm:$0xff]  ;;  %v188_v56 = vld [vmem:[#allocation8 + $0x2c8] sm:$0xff]  ;;  %v796_v58 = vpack.c.bf16 %v169_v49, %v165_v48 }
  0x76   :  { %787 = vmatprep.subr.bf16.mxu1 %v786_v23  ;;  %v192_v57 = vld [vmem:[#allocation8 + $0x2e8] sm:$0xff]  ;;  %v798_v59 = vpack.c.bf16 %v178_v51, %v174_v50  ;;  %v173_v60 = vld [vmem:[#allocation8 + $0x250] sm:$0xff]  ;;  %v182_v63 = vld [vmem:[#allocation8 + $0x298] sm:$0xff]  ;;  %v740_v1 = vpack.c.bf16 %v183_v55, %v179_v53 }
  0x77   :  { %725 = vmatpush1.bf16.msra.mxu0 %v724_v16  ;;  %v177_v61 = vld [vmem:[#allocation8 + $0x270] sm:$0xff]  ;;  %v98_v62 = vld [vmem:[#allocation2] sm:$0xff]  ;;  %v186_v0 = vld [vmem:[#allocation8 + $0x2b8] sm:$0xff]  ;;  %v742_v2 = vpack.c.bf16 %v192_v57, %v188_v56 }
  0x78   :  { %727 = vmatprep.subr.bf16.mxu0 %v726_v17  ;;  %313 = vmatprep.mubr.f32.mxu0 %v98_v62  ;;  %v187_v3 = vld [vmem:[#allocation8 + $0x2c0] sm:$0xff]  ;;  %v196_v5 = vld [vmem:[#allocation8 + $0x308] sm:$0xff]  ;;  %v800_v6 = vpack.c.bf16 %v177_v61, %v173_v60  ;;  %v802_v8 = vpack.c.bf16 %v186_v0, %v182_v63  ;;  %v181_v9 = vld [vmem:[#allocation8 + $0x290] sm:$0xff] }
  0x79   :  { %789 = vmatpush1.bf16.msra.mxu1 %v788_v33  ;;  %384 = vmatprep.mubr.f32.mxu1 %v98_v62  ;;  %v191_v4 = vld [vmem:[#allocation8 + $0x2e0] sm:$0xff]  ;;  %v200_v7 = vld [vmem:[#allocation8 + $0x328] sm:$0xff]  ;;  %v185_v10 = vld [vmem:[#allocation8 + $0x2b0] sm:$0xff] }
  0x7a   :  { %791 = vmatprep.subr.bf16.mxu1 %v790_v35  ;;  %v190_v11 = vld [vmem:[#allocation8 + $0x2d8] sm:$0xff]  ;;  %v744_v13 = vpack.c.bf16 %v191_v4, %v187_v3  ;;  %v746_v14 = vpack.c.bf16 %v200_v7, %v196_v5  ;;  %v195_v15 = vld [vmem:[#allocation8 + $0x300] sm:$0xff]  ;;  %v204_v17 = vld [vmem:[#allocation8 + $0x348] sm:$0xff]  ;;  %v804_v18 = vpack.c.bf16 %v185_v10, %v181_v9 }
  0x7b   :  { %729 = vmatpush1.bf16.msra.mxu0 %v728_v28  ;;  %v194_v12 = vld [vmem:[#allocation8 + $0x2f8] sm:$0xff]  ;;  %v199_v16 = vld [vmem:[#allocation8 + $0x320] sm:$0xff]  ;;  %v208_v19 = vld [vmem:[#allocation8 + $0x368] sm:$0xff] }
  0x7c   :  { %731 = vmatprep.subr.bf16.mxu0 %v730_v29  ;;  %v806_v20 = vpack.c.bf16 %v194_v12, %v190_v11  ;;  %v189_v21 = vld [vmem:[#allocation8 + $0x2d0] sm:$0xff]  ;;  %v198_v23 = vld [vmem:[#allocation8 + $0x318] sm:$0xff]  ;;  %v748_v25 = vpack.c.bf16 %v199_v16, %v195_v15  ;;  %v750_v26 = vpack.c.bf16 %v208_v19, %v204_v17  ;;  %v203_v27 = vld [vmem:[#allocation8 + $0x340] sm:$0xff] }
  0x7d   :  { %793 = vmatpush1.bf16.msra.mxu1 %v792_v45  ;;  %v193_v22 = vld [vmem:[#allocation8 + $0x2f0] sm:$0xff]  ;;  %v202_v24 = vld [vmem:[#allocation8 + $0x338] sm:$0xff]  ;;  %v207_v28 = vld [vmem:[#allocation8 + $0x360] sm:$0xff] }
  0x7e   :  { %795 = vmatprep.subr.bf16.mxu1 %v794_v47  ;;  %v212_v29 = vld [vmem:[#allocation8 + $0x388] sm:$0xff]  ;;  %v808_v30 = vpack.c.bf16 %v193_v22, %v189_v21  ;;  %v810_v32 = vpack.c.bf16 %v202_v24, %v198_v23  ;;  %v197_v33 = vld [vmem:[#allocation8 + $0x310] sm:$0xff]  ;;  %v206_v35 = vld [vmem:[#allocation8 + $0x358] sm:$0xff]  ;;  %v752_v37 = vpack.c.bf16 %v207_v28, %v203_v27 }
  0x7f   :  { %733 = vmatpush1.bf16.msra.mxu0 %v732_v40  ;;  %v216_v31 = vld [vmem:[#allocation8 + $0x3a8] sm:$0xff]  ;;  %v201_v34 = vld [vmem:[#allocation8 + $0x330] sm:$0xff]  ;;  %v210_v36 = vld [vmem:[#allocation8 + $0x378] sm:$0xff] }
  0x80   :  { %735 = vmatprep.subr.bf16.mxu0 %v734_v41  ;;  %v754_v38 = vpack.c.bf16 %v216_v31, %v212_v29  ;;  %v211_v39 = vld [vmem:[#allocation8 + $0x380] sm:$0xff]  ;;  %v220_v41 = vld [vmem:[#allocation8 + $0x3c8] sm:$0xff]  ;;  %v812_v42 = vpack.c.bf16 %v201_v34, %v197_v33  ;;  %v814_v44 = vpack.c.bf16 %v210_v36, %v206_v35  ;;  %v205_v45 = vld [vmem:[#allocation8 + $0x350] sm:$0xff] }
  0x81   :  { %797 = vmatpush1.bf16.msra.mxu1 %v796_v58  ;;  %v215_v40 = vld [vmem:[#allocation8 + $0x3a0] sm:$0xff]  ;;  %v224_v43 = vld [vmem:[#allocation8 + $0x3e8] sm:$0xff]  ;;  %v209_v46 = vld [vmem:[#allocation8 + $0x370] sm:$0xff] }
  0x82   :  { %799 = vmatprep.subr.bf16.mxu1 %v798_v59  ;;  %v214_v47 = vld [vmem:[#allocation8 + $0x398] sm:$0xff]  ;;  %v756_v49 = vpack.c.bf16 %v215_v40, %v211_v39  ;;  %v758_v50 = vpack.c.bf16 %v224_v43, %v220_v41  ;;  %v219_v51 = vld [vmem:[#allocation8 + $0x3c0] sm:$0xff]  ;;  %v816_v53 = vpack.c.bf16 %v209_v46, %v205_v45  ;;  %v213_v55 = vld [vmem:[#allocation8 + $0x390] sm:$0xff] }
  0x83   :  { %737 = vmatpush1.bf16.msra.mxu0 %v736_v52  ;;  %v218_v48 = vld [vmem:[#allocation8 + $0x3b8] sm:$0xff]  ;;  %v223_v52 = vld [vmem:[#allocation8 + $0x3e0] sm:$0xff]  ;;  %v217_v56 = vld [vmem:[#allocation8 + $0x3b0] sm:$0xff] }
  0x84   :  { %739 = vmatprep.subr.bf16.mxu0 %v738_v54  ;;  %v818_v54 = vpack.c.bf16 %v218_v48, %v214_v47  ;;  %v222_v57 = vld [vmem:[#allocation8 + $0x3d8] sm:$0xff]  ;;  %v760_v59 = vpack.c.bf16 %v223_v52, %v219_v51  ;;  %v820_v60 = vpack.c.bf16 %v217_v56, %v213_v55  ;;  %v221_v62 = vld [vmem:[#allocation8 + $0x3d0] sm:$0xff]  ;;  %v424_v3 = vld [vmem:[#allocation10 + $0x28] sm:$0xff] }
  0x85   :  { %801 = vmatpush1.bf16.msra.mxu1 %v800_v6  ;;  %v226_v58 = vld [vmem:[#allocation8 + $0x3f8] sm:$0xff]  ;;  %v225_v63 = vld [vmem:[#allocation8 + $0x3f0] sm:$0xff]  ;;  %v419_v7 = vld [vmem:[#allocation10] sm:$0xff] }
  0x86   :  { %803 = vmatprep.subr.bf16.mxu1 %v802_v8  ;;  %v822_v61 = vpack.c.bf16 %v226_v58, %v222_v57  ;;  %v97_v0 = vld [vmem:[#allocation5] sm:$0xff]  ;;  %v422_v4 = vld [vmem:[#allocation10 + $0x18] sm:$0xff]  ;;  %v423_v8 = vld [vmem:[#allocation10 + $0x20] sm:$0xff] }
  0x87   :  { %741 = vmatpush1.bf16.msra.mxu0 %v740_v1  ;;  %v824_v1 = vpack.c.bf16 %v225_v63, %v221_v62  ;;  %v426_v6 = vld [vmem:[#allocation10 + $0x38] sm:$0xff]  ;;  %v828_v10 = vpack.c.bf16 %v423_v8, %v419_v7  ;;  %v421_v11 = vld [vmem:[#allocation10 + $0x10] sm:$0xff]  ;;  %v432_v15 = vld [vmem:[#allocation10 + $0x68] sm:$0xff] }
  0x88   :  { %743 = vmatprep.subr.bf16.mxu0 %v742_v2  ;;  %v420_v2 = vld [vmem:[#allocation10 + $0x8] sm:$0xff]  ;;  %v858_v9 = vpack.c.bf16 %v426_v6, %v422_v4  ;;  %v425_v12 = vld [vmem:[#allocation10 + $0x30] sm:$0xff]  ;;  %v430_v16 = vld [vmem:[#allocation10 + $0x58] sm:$0xff] }
  0x89   :  { %805 = vmatpush1.bf16.msra.mxu1 %v804_v18  ;;  %v826_v5 = vpack.c.bf16 %v424_v3, %v420_v2  ;;  %v434_v18 = vld [vmem:[#allocation10 + $0x78] sm:$0xff]  ;;  %v427_v19 = vld [vmem:[#allocation10 + $0x40] sm:$0xff]  ;;  %v429_v23 = vld [vmem:[#allocation10 + $0x50] sm:$0xff] }
  0x8a   :  { %807 = vmatprep.subr.bf16.mxu1 %v806_v20  ;;  %v431_v20 = vld [vmem:[#allocation10 + $0x60] sm:$0xff]  ;;  %v862_v21 = vpack.c.bf16 %v434_v18, %v430_v16  ;;  %v433_v24 = vld [vmem:[#allocation10 + $0x70] sm:$0xff]  ;;  %v440_v27 = vld [vmem:[#allocation10 + $0xa8] sm:$0xff] }
  0x8b   :  { %745 = vmatpush1.bf16.msra.mxu0 %v744_v13  ;;  %v860_v13 = vpack.c.bf16 %v425_v12, %v421_v11  ;;  %v832_v22 = vpack.c.bf16 %v431_v20, %v427_v19  ;;  %v438_v28 = vld [vmem:[#allocation10 + $0x98] sm:$0xff]  ;;  %v435_v31 = vld [vmem:[#allocation10 + $0x80] sm:$0xff]  ;;  %v437_v35 = vld [vmem:[#allocation10 + $0x90] sm:$0xff] }
  0x8c   :  { %747 = vmatprep.subr.bf16.mxu0 %v746_v14  ;;  %v428_v14 = vld [vmem:[#allocation10 + $0x48] sm:$0xff]  ;;  %v441_v36 = vld [vmem:[#allocation10 + $0xb0] sm:$0xff]  ;;  %v446_v40 = vld [vmem:[#allocation10 + $0xd8] sm:$0xff] }
  0x8d   :  { %809 = vmatpush1.bf16.msra.mxu1 %v808_v30  ;;  %v830_v17 = vpack.c.bf16 %v432_v15, %v428_v14  ;;  %v442_v30 = vld [vmem:[#allocation10 + $0xb8] sm:$0xff]  ;;  %v448_v39 = vld [vmem:[#allocation10 + $0xe8] sm:$0xff]  ;;  %v443_v43 = vld [vmem:[#allocation10 + $0xc0] sm:$0xff] }
  0x8e   :  { %811 = vmatprep.subr.bf16.mxu1 %v810_v32  ;;  %v439_v32 = vld [vmem:[#allocation10 + $0xa0] sm:$0xff]  ;;  %v866_v33 = vpack.c.bf16 %v442_v30, %v438_v28  ;;  %v445_v47 = vld [vmem:[#allocation10 + $0xd0] sm:$0xff]  ;;  %v456_v51 = vld [vmem:[#allocation10 + $0x128] sm:$0xff] }
  0x8f   :  { %749 = vmatpush1.bf16.msra.mxu0 %v748_v25  ;;  %v864_v25 = vpack.c.bf16 %v433_v24, %v429_v23  ;;  %v836_v34 = vpack.c.bf16 %v439_v32, %v435_v31  ;;  %v449_v48 = vld [vmem:[#allocation10 + $0xf0] sm:$0xff]  ;;  %v454_v52 = vld [vmem:[#allocation10 + $0x118] sm:$0xff]  ;;  %v451_v55 = vld [vmem:[#allocation10 + $0x100] sm:$0xff] }
  0x90   :  { %751 = vmatprep.subr.bf16.mxu0 %v750_v26  ;;  %v436_v26 = vld [vmem:[#allocation10 + $0x88] sm:$0xff]  ;;  %v455_v56 = vld [vmem:[#allocation10 + $0x120] sm:$0xff]  ;;  %v466_v2 = vld [vmem:[#allocation10 + $0x178] sm:$0xff] }
  0x91   :  { %813 = vmatpush1.bf16.msra.mxu1 %v812_v42  ;;  %v834_v29 = vpack.c.bf16 %v440_v27, %v436_v26  ;;  %v450_v42 = vld [vmem:[#allocation10 + $0xf8] sm:$0xff]  ;;  %v844_v58 = vpack.c.bf16 %v455_v56, %v451_v55  ;;  %v460_v62 = vld [vmem:[#allocation10 + $0x148] sm:$0xff]  ;;  %v459_v3 = vld [vmem:[#allocation10 + $0x140] sm:$0xff] }
  0x92   :  { %815 = vmatprep.subr.bf16.mxu1 %v814_v44  ;;  %v447_v44 = vld [vmem:[#allocation10 + $0xe0] sm:$0xff]  ;;  %v870_v45 = vpack.c.bf16 %v450_v42, %v446_v40  ;;  %v464_v63 = vld [vmem:[#allocation10 + $0x168] sm:$0xff]  ;;  %v461_v7 = vld [vmem:[#allocation10 + $0x150] sm:$0xff] }
  0x93   :  { %753 = vmatpush1.bf16.msra.mxu0 %v752_v37  ;;  %v868_v37 = vpack.c.bf16 %v441_v36, %v437_v35  ;;  %v840_v46 = vpack.c.bf16 %v447_v44, %v443_v43  ;;  %v463_v4 = vld [vmem:[#allocation10 + $0x160] sm:$0xff]  ;;  %v465_v8 = vld [vmem:[#allocation10 + $0x170] sm:$0xff]  ;;  %v472_v11 = vld [vmem:[#allocation10 + $0x1a8] sm:$0xff]  ;;  %v229_v35 = vlaneseq }
  0x94   :  { %755 = vmatprep.subr.bf16.mxu0 %v754_v38  ;;  %v444_v38 = vld [vmem:[#allocation10 + $0xc8] sm:$0xff]  ;;  %v848_v6 = vpack.c.bf16 %v463_v4, %v459_v3  ;;  %v470_v12 = vld [vmem:[#allocation10 + $0x198] sm:$0xff]  ;;  %v467_v15 = vld [vmem:[#allocation10 + $0x180] sm:$0xff] }
  0x95   :  { %817 = vmatpush1.bf16.msra.mxu1 %v816_v53  ;;  %v838_v41 = vpack.c.bf16 %v448_v39, %v444_v38  ;;  %v474_v14 = vld [vmem:[#allocation10 + $0x1b8] sm:$0xff]  ;;  %v471_v16 = vld [vmem:[#allocation10 + $0x1a0] sm:$0xff]  ;;  %v469_v19 = vld [vmem:[#allocation10 + $0x190] sm:$0xff]  ;;  %v1237_v36 = vshrl.u32 %v229_v35, 7 }
  0x96   :  { %819 = vmatprep.subr.bf16.mxu1 %v818_v54  ;;  %v458_v54 = vld [vmem:[#allocation10 + $0x138] sm:$0xff]  ;;  %v852_v18 = vpack.c.bf16 %v471_v16, %v467_v15  ;;  %v473_v20 = vld [vmem:[#allocation10 + $0x1b0] sm:$0xff]  ;;  %v480_v23 = vld [vmem:[#allocation10 + $0x1e8] sm:$0xff] }
  0x97   :  { %757 = vmatpush1.bf16.msra.mxu0 %v756_v49  ;;  %v872_v49 = vpack.c.bf16 %v449_v48, %v445_v47  ;;  %v874_v57 = vpack.c.bf16 %v458_v54, %v454_v52  ;;  %v478_v24 = vld [vmem:[#allocation10 + $0x1d8] sm:$0xff]  ;;  %v475_v27 = vld [vmem:[#allocation10 + $0x1c0] sm:$0xff]  ;;  %v477_v31 = vld [vmem:[#allocation10 + $0x1d0] sm:$0xff]  ;;  %v235_v39 = vsub.s32 1, %v1237_v36  ;;  %v243_v42 = vsub.s32 3, %v1237_v36 }
  0x98   :  { %759 = vmatprep.subr.bf16.mxu0 %v758_v50  ;;  %v452_v50 = vld [vmem:[#allocation10 + $0x108] sm:$0xff]  ;;  %v482_v26 = vld [vmem:[#allocation10 + $0x1f8] sm:$0xff]  ;;  %v479_v28 = vld [vmem:[#allocation10 + $0x1e0] sm:$0xff] }
  0x99   :  { %821 = vmatpush1.bf16.msra.mxu1 %v820_v60  ;;  %v842_v53 = vpack.c.bf16 %v456_v51, %v452_v50  ;;  %v457_v60 = vld [vmem:[#allocation10 + $0x130] sm:$0xff]  ;;  %v856_v30 = vpack.c.bf16 %v479_v28, %v475_v27  ;;  %v227_v38 = vld [vmem:[%s1305_s4] sm:$0xf]  ;;  %v239_v50 = vsub.s32 2, %v1237_v36  ;;  %s1111_s4 = smov [#allocation12]  }
  0x9a   :  { %823 = vmatprep.subr.bf16.mxu1 %v822_v61  ;;  %v481_v32 = vld [vmem:[#allocation10 + $0x1f0] sm:$0xff]  ;;  %v244_v48 = vrot.slane %v227_v38, %v243_v42  ;;  %s667_s10 = sshll.u32 %s1111_s4, 4  ;;  %s668_s10 = int_to_ptr.vmem [resolvable:$true] %s667_s10 }
  0x9b   :  { %761 = vmatpush1.bf16.msra.mxu0 %v760_v59  ;;  %v453_v59 = vld [vmem:[#allocation10 + $0x110] sm:$0xff]  ;;  %v240_v54 = vrot.slane %v227_v38, %v239_v50  ;;  %s1027_s25 = scalar_lea.vmem %s668_s10, 128  ;;  %p1032_p13 = scmp.lt.s32.totalorder %s668_s10, %s668_s10 }
  0x9c   :  { %827 = vmatprep.subr.bf16.mxu0 %v826_v5  ;;  %v876_v61 = vpack.c.bf16 %v457_v60, %v453_v59  ;;  %p1028_p12 = scmp.ne.s32.totalorder %s668_s10, %s1027_s25  ;;  %p1033_p0 = scmp.lt.s32.totalorder %s1027_s25, %s1027_s25 }
  0x9d   :  { %825 = vmatpush1.bf16.msra.mxu1 %v824_v1  ;;  %v846_v1 = vpack.c.bf16 %v464_v63, %v460_v62  ;;  %v391_v63 = vld [vmem:[#allocation7] sm:$0xff] }
  0x9e   :  { %314 = vmatmul.mubr.f32.vlgmr.msra.gmra.mrb[0].mxu0 %v97_v0  ;;  %859 = vmatprep.subr.bf16.mxu1 %v858_v9  ;;  %v880_v9 = vpack.c.bf16 %v465_v8, %v461_v7  ;;  %p1034_p1 = por %p1033_p0, %p1032_p13 }
  0x9f   :  { %829 = vmatpush1.bf16.msra.mxu0 %v828_v10  ;;  %v468_v10 = vld [vmem:[#allocation10 + $0x188] sm:$0xff] }
  0xa0   :  { %385 = vmatmul.mubr.f32.vlgmr.msra.gmra.mrb[0].mxu1 %v97_v0  ;;  %831 = vmatprep.subr.bf16.mxu0 %v830_v17  ;;  %v462_v0 = vld [vmem:[#allocation10 + $0x158] sm:$0xff]  ;;  %v882_v17 = vpack.c.bf16 %v474_v14, %v470_v12  ;;  %p1035_p2 = pnand %p1034_p1, %p1028_p12 }
  0xa1   :  { %861 = vmatpush1.bf16.msra.mxu1 %v860_v13  ;;  %v878_v5 = vpack.c.bf16 %v466_v2, %v462_v0  ;;  %v850_v13 = vpack.c.bf16 %v472_v11, %v468_v10 }
  0xa2   :  { %863 = vmatprep.subr.bf16.mxu1 %v862_v21  ;;  %v884_v21 = vpack.c.bf16 %v473_v20, %v469_v19 }
  0xa3   :  { %833 = vmatpush1.bf16.msra.mxu0 %v832_v22  ;;  %v476_v22 = vld [vmem:[#allocation10 + $0x1c8] sm:$0xff] }
  0xa4   :  { %835 = vmatprep.subr.bf16.mxu0 %v834_v29  ;;  %v886_v29 = vpack.c.bf16 %v482_v26, %v478_v24 }
  0xa5   :  { %865 = vmatpush1.bf16.msra.mxu1 %v864_v25  ;;  %v854_v25 = vpack.c.bf16 %v480_v23, %v476_v22 }
  0xa6   :  { %867 = vmatprep.subr.bf16.mxu1 %v866_v33  ;;  %v888_v33 = vpack.c.bf16 %v481_v32, %v477_v31 }
  0xa7   :  { %837 = vmatpush1.bf16.msra.mxu0 %v836_v34  ;;  %v1110_v34 = vmov 0.0  }
  0xa8   :  { %839 = vmatprep.subr.bf16.mxu0 %v838_v41  ;;  %569 = vmatprep.mubr.f32.mxu0 %v1110_v34  ;;  %v236_v41 = vrot.slane %v227_v38, %v235_v39 }
  0xa9   :  { %869 = vmatpush1.bf16.msra.mxu1 %v868_v37  ;;  %640 = vmatprep.mubr.f32.mxu1 %v1110_v34  ;;  %v231_v37 = vsub.s32 0, %v1237_v36 }
  0xaa   :  { %871 = vmatprep.subr.bf16.mxu1 %v870_v45 }
  0xab   :  { %841 = vmatpush1.bf16.msra.mxu0 %v840_v46  ;;  %v232_v40 = vrot.slane %v227_v38, %v231_v37 }
  0xac   :  { %843 = vmatprep.subr.bf16.mxu0 %v842_v53 }
  0xad   :  { %873 = vmatpush1.bf16.msra.mxu1 %v872_v49 }
  0xae   :  { %875 = vmatprep.subr.bf16.mxu1 %v874_v57 }
  0xaf   :  { %845 = vmatpush1.bf16.msra.mxu0 %v844_v58 }
  0xb0   :  { %847 = vmatprep.subr.bf16.mxu0 %v846_v1 }
  0xb1   :  { %877 = vmatpush1.bf16.msra.mxu1 %v876_v61 }
  0xb2   :  { %879 = vmatprep.subr.bf16.mxu1 %v878_v5 }
  0xb3   :  { %849 = vmatpush1.bf16.msra.mxu0 %v848_v6 }
  0xb4   :  { %851 = vmatprep.subr.bf16.mxu0 %v850_v13 }
  0xb5   :  { %881 = vmatpush1.bf16.msra.mxu1 %v880_v9 }
  0xb6   :  { %883 = vmatprep.subr.bf16.mxu1 %v882_v17 }
  0xb7   :  { %853 = vmatpush1.bf16.msra.mxu0 %v852_v18 }
  0xb8   :  { %855 = vmatprep.subr.bf16.mxu0 %v854_v25 }
  0xb9   :  { %885 = vmatpush1.bf16.msra.mxu1 %v884_v21 }
  0xba   :  { %887 = vmatprep.subr.bf16.mxu1 %v886_v29 }
  0xbb   :  { %857 = vmatpush1.bf16.msra.mxu0 %v856_v30 }
  0xbd   :  { %889 = vmatpush1.bf16.msra.mxu1 %v888_v33 }
 0x171   :  { %v315_v43 = vpop.f32.mrb[0].mxu0 }
 0x172   :  { %v316_v44 = vadd.f32 %v315_v43, %v232_v40  ;;  %v317_v45 = vpop.f32.mrb[1].mxu0 }
 0x173   :  { %v318_v46 = vadd.f32 %v317_v45, %v236_v41  ;;  %v386_v51 = vpop.f32.mrb[0].mxu1 }
 0x174   :  { %v695_v47 = vmul.f32 -1.442695, %v316_v44  ;;  %v388_v52 = vpop.f32.mrb[1].mxu1  ;;  %v387_v56 = vadd.f32 %v386_v51, %v240_v54 }
 0x175   :  { %v696_v49 = vmul.f32 -1.442695, %v318_v46  ;;  %v389_v53 = vadd.f32 %v388_v52, %v244_v48 }
 0x176   :  { %901 = vpow2.f32 %v695_v47 }
 0x177   :  { %903 = vpow2.f32 %v696_v49  ;;  %v697_v55 = vmul.f32 -1.442695, %v389_v53 }
 0x179   :  { %905 = vpow2.f32 %v697_v55 }
 0x17a   :  { %907 = vtanh.f32 %v387_v56 }
 0x180   :  { %v902_v57 = vpop.eup %901 }
 0x181   :  { %v904_v58 = vpop.eup %903  ;;  %v395_v59 = vadd.f32 1.0, %v902_v57 }
 0x182   :  { %v401_v60 = vadd.f32 1.0, %v904_v58 }
 0x183   :  { %909 = vrcp.f32 %v395_v59  ;;  %v906_v61 = vpop.eup %905 }
 0x184   :  { %911 = vrcp.f32 %v401_v60  ;;  %v908_v62 = vpop.eup %907  ;;  %v408_v1 = vadd.f32 1.0, %v906_v61 }
 0x186   :  { %913 = vrcp.f32 %v408_v1 }
 0x18d   :  { %v910_v0 = vpop.eup %909 }
 0x18e   :  { %v912_v2 = vpop.eup %911  ;;  %v412_v3 = vmul.f32 %v910_v0, %v908_v62 }
 0x18f   :  { %v411_v4 = vmul.f32 %v912_v2, %v391_v63 }
 0x190   :  { %v914_v6 = vpop.eup %913 }
 0x191   :  { %v413_v5 = vadd.f32 %v412_v3, %v411_v4 }
 0x193   :  { %915 = vtanh.f32 %v413_v5  ;;  %417 = vst [vmem:[#allocation14] sm:$0xff] %v413_v5 }
 0x19d   :  { %v916_v7 = vpop.eup %915 }
 0x19e   :  { %v415_v8 = vmul.f32 %v916_v7, %v914_v6 }
 0x1a0   :  { %416 = vst [vmem:[#allocation12] sm:$0xff] %v415_v8  ;;  %570 = vmatmul.mubr.f32.vlgmr.msra.gmra.mrb[2].mxu0 %v415_v8  ;;  %641 = vmatmul.mubr.f32.vlgmr.msra.gmra.mrb[2].mxu1 %v415_v8 }
 0x1a1   :  { %1038 = shalt.err (!%p1035_p2)
}
 0x1a2   :  { %s1039_s28 = scalar_lea.hbm %s1309_s8, 128 }
 0x1a3   :  { %p1040_p3 = scmp.ne.s32.totalorder %s1309_s8, %s1039_s28  ;;  %p1043_p4 = scmp.lt.u32.totalorder %s1039_s28, %s1309_s8 }
 0x1a5   :  { %p1045_p5 = pnand %p1043_p4, %p1040_p3 }
 0x1a7   :  { %1048 = shalt.err (!%p1045_p5)
}
 0x1a8   :  { %670 = dma.vmem_to_hbm [thread:$0]  %s668_s10, 128, %s1309_s8, [#allocation13]  }
 0x1a9   :  { %s1112_s15 = smov [#allocation14]  }
 0x1aa   :  { %s677_s16 = sshll.u32 %s1112_s15, 4  ;;  %s678_s16 = int_to_ptr.vmem [resolvable:$true] %s677_s16 }
 0x1ab   :  { %s1049_s18 = scalar_lea.vmem %s678_s16, 128  ;;  %p1054_p7 = scmp.lt.s32.totalorder %s678_s16, %s678_s16 }
 0x1ac   :  { %p1050_p6 = scmp.ne.s32.totalorder %s678_s16, %s1049_s18  ;;  %p1055_p8 = scmp.lt.s32.totalorder %s1049_s18, %s1049_s18 }
 0x1ae   :  { %p1056_p9 = por %p1055_p8, %p1054_p7 }
 0x1b0   :  { %p1057_p10 = pnand %p1056_p9, %p1050_p6 }
 0x1b2   :  { %1060 = shalt.err (!%p1057_p10)
}
 0x1b3   :  { %s1061_s21 = scalar_lea.hbm %s1310_s9, 128 }
 0x1b4   :  { %p1062_p11 = scmp.ne.s32.totalorder %s1310_s9, %s1061_s21  ;;  %p1065_p12 = scmp.lt.u32.totalorder %s1061_s21, %s1310_s9 }
 0x1b6   :  { %p1067_p13 = pnand %p1065_p12, %p1062_p11 }
 0x1b8   :  { %1070 = shalt.err (!%p1067_p13)
}
 0x1b9   :  { %680 = dma.vmem_to_hbm [thread:$0]  %s678_s16, 128, %s1310_s9, [#allocation13]   ;;  %v483_v9 = vld [vmem:[%s1307_s6] sm:$0xf] }
 0x1ba   :  { %v488_v10 = vrot.slane %v483_v9, %v231_v37  ;;  %v496_v11 = vrot.slane %v483_v9, %v239_v50  ;;  %v492_v12 = vrot.slane %v483_v9, %v235_v39  ;;  %v500_v13 = vrot.slane %v483_v9, %v243_v42  ;;  %s1113_s5 = smov [#allocation11]  }
 0x1bb   :  { %s657_s1 = sshll.u32 %s1113_s5, 4  ;;  %s658_s1 = int_to_ptr.vmem [resolvable:$true] %s657_s1 }
 0x1bc   :  { %s1071_s6 = scalar_lea.vmem %s658_s1, 512  ;;  %p1076_p1 = scmp.lt.s32.totalorder %s658_s1, %s658_s1 }
 0x1bd   :  { %p1072_p0 = scmp.ne.s32.totalorder %s658_s1, %s1071_s6  ;;  %p1077_p2 = scmp.lt.s32.totalorder %s1071_s6, %s1071_s6 }
 0x1bf   :  { %p1078_p3 = por %p1077_p2, %p1076_p1 }
 0x1c1   :  { %p1079_p4 = pnand %p1078_p3, %p1072_p0 }
 0x273   :  { %v571_v14 = vpop.f32.mrb[2].mxu0  ;;  %v642_v15 = vpop.f32.mrb[2].mxu1 }
 0x274   :  { %v572_v16 = vadd.f32 %v571_v14, %v488_v10  ;;  %v643_v17 = vadd.f32 %v642_v15, %v496_v11  ;;  %v573_v18 = vpop.f32.mrb[3].mxu0  ;;  %v644_v19 = vpop.f32.mrb[3].mxu1 }
 0x275   :  { %v574_v20 = vadd.f32 %v573_v18, %v492_v12  ;;  %v645_v21 = vadd.f32 %v644_v19, %v500_v13 }
 0x276   :  { %647 = vst [vmem:[#allocation11] sm:$0xff] %v572_v16  ;;  %649 = vst [vmem:[#allocation11 + $0x10] sm:$0xff] %v643_v17 }
 0x277   :  { %648 = vst [vmem:[#allocation11 + $0x8] sm:$0xff] %v574_v20  ;;  %650 = vst [vmem:[#allocation11 + $0x18] sm:$0xff] %v645_v21 }
 0x278   :  { %1082 = shalt.err (!%p1079_p4)
}
 0x279   :  { %s1083_s10 = scalar_lea.hbm %s1308_s7, 512 }
 0x27a   :  { %p1084_p5 = scmp.ne.s32.totalorder %s1308_s7, %s1083_s10  ;;  %p1087_p6 = scmp.lt.u32.totalorder %s1083_s10, %s1308_s7 }
 0x27c   :  { %p1089_p7 = pnand %p1087_p6, %p1084_p5 }
 0x27e   :  { %1092 = shalt.err (!%p1089_p7)
}
 0x27f   :  { %660 = dma.vmem_to_hbm [thread:$0]  %s658_s1, 512, %s1308_s7, [#allocation4]  }
 0x280   :  { %1099 = dma.done.wait [#allocation4], 512  }
 0x281   :  { %1100 = vsyncadd [#allocation4], 4294966784 }
 0x282   :  { %1101 = dma.done.wait [#allocation13], 256  }
 0x283   :  { %1102 = vsyncadd [#allocation13], 4294967040 }
 0x284   :  { %690 = vsyncpa [#allocation3], 1 }
 0x285   :  { %691 = vsyncpa [#allocation6], 1 }
 0x286   :  { %692 = vsyncpa [#allocation9], 1 }
 0x287   :  { %693 = vsyncpa [#allocation4], 1 }
 0x288   :  { %694 = vsyncpa [#allocation13], 1 }

</bundles_post_ra>
